<compile_context>
chip_gen: v7x
topology: tpu7x:2x2x1
jax: 0.10.0
libtpu: 0.0.40
codegen_flags: <defaults>
</compile_context>

<pallas_src>
import jax
import jax.numpy as jnp
from jax.experimental import pallas as pl
from jax.experimental.pallas import tpu as pltpu


_LANES = 128


def _round_up(a, b):
    return -(-a // b) * b


def _sublane_multiple(dtype):
    itemsize = jnp.dtype(dtype).itemsize
    return {4: 8, 2: 16, 1: 32}.get(itemsize, 8)


def _sin_kernel(x_ref, o_ref):
    # Elementwise sin on the full VMEM tile (VPU/EUP); kernel is HBM-bound
    # on v5e/v6e, so the job is just to stream large lane-dense tiles.
    o_ref[...] = jnp.sin(x_ref[...])


def sin_pallas(x, *, cols=1024):
    """Elementwise sin via a Pallas TPU kernel. Accepts any shape/dtype."""
    orig_shape = x.shape
    dtype = x.dtype
    n = x.size
    if n == 0:
        return x

    itemsize = jnp.dtype(dtype).itemsize
    sublane = _sublane_multiple(dtype)
    assert cols % _LANES == 0, "cols must be a multiple of 128 (lane width)"

    # --- per-generation tile sizing ---------------------------------------
    try:
        vmem_cap = pltpu.get_tpu_info().vmem_capacity_bytes
    except Exception:  # e.g. interpret mode
        vmem_cap = 64 * 1024 * 1024
    # input + output, each double-buffered => ~4 live blocks; keep headroom.
    target_block_bytes = min(4 * 1024 * 1024, vmem_cap // 16)

    rows = -(-n // cols)  # ceil(n / cols)
    target_rows = max(
        sublane,
        (target_block_bytes // (cols * itemsize)) // sublane * sublane,
    )
    tile_r = min(target_rows, _round_up(rows, sublane))
    pad_rows = _round_up(rows, tile_r)
    grid = (pad_rows // tile_r,)

    block_bytes = tile_r * cols * itemsize
    # v5e's default scoped VMEM is 16 MiB; raise it so the big tiles can
    # double-buffer. Never exceed the physical capacity (v7x: 64 MiB).
    vmem_limit = int(min(vmem_cap, max(32 * 1024 * 1024, 6 * block_bytes)))

    # --- layout: flatten to a lane-dense 2-D slab --------------------------
    flat = x.reshape(-1)
    pad_n = pad_rows * cols - n
    if pad_n:
        # Only taken when not already tile-aligned; single jnp.pad, no
        # zeros+scatter full-size copy. sin(0) == 0 and the tail is dropped.
        flat = jnp.pad(flat, (0, pad_n))
    x2d = flat.reshape(pad_rows, cols)

    out2d = pl.pallas_call(
        _sin_kernel,
        out_shape=jax.ShapeDtypeStruct((pad_rows, cols), dtype),
        grid=grid,
        in_specs=[pl.BlockSpec((tile_r, cols), lambda i: (i, 0))],
        out_specs=pl.BlockSpec((tile_r, cols), lambda i: (i, 0)),
        compiler_params=pltpu.CompilerParams(
            dimension_semantics=("parallel",),   # shards across TCs on v7x
            vmem_limit_bytes=vmem_limit,
        ),
    )(x2d)

    if pad_n:
        return out2d.reshape(-1)[:n].reshape(orig_shape)
    return out2d.reshape(orig_shape)


if __name__ == "__main__":
    key = jax.random.PRNGKey(0)
    # Small NCHW-like input consistent with typical module usage.
    x = jax.random.normal(key, (2, 4, 16, 16), dtype=jnp.float32)

    y = sin_pallas(x)
    jax.block_until_ready(y)

    # Correctness check against plain JAX reference.
    y_ref = jnp.sin(x)
    assert jnp.allclose(y, y_ref, atol=2e-6, rtol=2e-6), "mismatch vs jnp.sin"

    print("KERNEL_OK")
</pallas_src>

<mosaic_0001>
module attributes {stable_mosaic.version = 11 : i64} {
  func.func @_sin_kernel(%arg0: i32, %arg1: memref<8x1024xf32, #tpu.memory_space<vmem>>, %arg2: memref<8x1024xf32, #tpu.memory_space<vmem>>) attributes {dimension_semantics = [#tpu.dimension_semantics<parallel>], iteration_bounds = array<i64: 1>, scalar_prefetch = 0 : i64, scratch_operands = 0 : i64, tpu.core_type = #tpu.core_type<tc>, window_params = [{transform_indices = @transform_0, window_bounds = array<i64: 8, 1024>}, {transform_indices = @transform_1, window_bounds = array<i64: 8, 1024>}]} {
    %c0 = arith.constant 0 : index
    %c0_0 = arith.constant 0 : index
    %0 = vector.load %arg1[%c0, %c0_0] : memref<8x1024xf32, #tpu.memory_space<vmem>>, vector<8x1024xf32>
    %1 = math.sin %0 : vector<8x1024xf32>
    %c0_1 = arith.constant 0 : index
    %c0_2 = arith.constant 0 : index
    %2 = vector.load %arg2[%c0_1, %c0_2] : memref<8x1024xf32, #tpu.memory_space<vmem>>, vector<8x1024xf32>
    tpu.vector_store %arg2[%c0_1, %c0_2], %1 {strides = array<i32>} : memref<8x1024xf32, #tpu.memory_space<vmem>>, vector<8x1024xf32>,
    return
  }
  func.func @transform_0(%arg0: i32) -> (i32, i32) {
    %c0_i32 = arith.constant 0 : i32
    %c0_i32_0 = arith.constant 0 : i32
    return %arg0, %c0_i32 : i32, i32
  }
  func.func @transform_1(%arg0: i32) -> (i32, i32) {
    %c0_i32 = arith.constant 0 : i32
    %c0_i32_0 = arith.constant 0 : i32
    return %arg0, %c0_i32 : i32, i32
  }
}

</mosaic_0001>

<bundles_post_ra>
// kernel: tpu_custom_call.1
= control target key start
LH: loop header
LB: loop body
LE: loop exit
PB: predicated region body
PF: predicated region fallthrough
CT: control target
= control target key end

     0   :  { %6 = vsyncpa [#allocation3], 0  ;;  %s1668_s0 = inlined_call_operand.hbm [shape: f32[8,1024], index: 0, kind: input, shape index: {}]   ;;  %s1669_s1 = inlined_call_operand.hbm [shape: f32[8,1024], index: 1, kind: output, shape index: {}]  }
   0x1   :  { %7 = vsyncpa [#allocation4], 0  ;;  %s1036_s6 = smov [#allocation2]   ;;  %s988_s10 = scalar_lea.hbm %s1668_s0, 1024 }
   0x2   :  { %s14_s7 = sshll.u32 %s1036_s6, 4  ;;  %p989_p0 = scmp.ne.s32.totalorder %s1668_s0, %s988_s10  ;;  %s15_s7 = int_to_ptr.vmem [resolvable:$true] %s14_s7 }
   0x3   :  { %p992_p1 = scmp.lt.u32.totalorder %s988_s10, %s1668_s0 }
   0x5   :  { %p994_p2 = pnand %p992_p1, %p989_p0 }
   0x7   :  { %997 = shalt.err (!%p994_p2)
}
   0x8   :  { %s998_s15 = scalar_lea.vmem %s15_s7, 1024  ;;  %p1003_p4 = scmp.lt.s32.totalorder %s15_s7, %s15_s7 }
   0x9   :  { %p999_p3 = scmp.ne.s32.totalorder %s15_s7, %s998_s15  ;;  %p1004_p5 = scmp.lt.s32.totalorder %s998_s15, %s998_s15 }
   0xb   :  { %p1005_p6 = por %p1004_p5, %p1003_p4 }
   0xd   :  { %p1006_p7 = pnand %p1005_p6, %p999_p3 }
   0xf   :  { %1009 = shalt.err (!%p1006_p7)
}
  0x10   :  { %17 = dma.hbm_to_vmem [thread:$0]  %s1668_s0, 1024, %s15_s7, [#allocation3]  }
  0x11   :  { %1032 = dma.done.wait [#allocation3], 1024  }
  0x12   :  { %1033 = vsyncadd [#allocation3], 4294966272  ;;  %v1066_v0 = vld [vmem:[#allocation2] sm:$0xff]  ;;  %v1068_v1 = vld [vmem:[#allocation2 + $0x8] sm:$0xff]  ;;  %v1037_v32 = vmov 683565275  }
  0x13   :  { %v1070_v2 = vld [vmem:[#allocation2 + $0x10] sm:$0xff]  ;;  %v29_v3 = vand.u32 2147483647, %v1066_v0  ;;  %v32_v4 = vand.u32 2139095040, %v1066_v0  ;;  %v133_v5 = vand.u32 2147483647, %v1068_v1 }
  0x14   :  { %v136_v7 = vand.u32 2139095040, %v1068_v1  ;;  %v240_v9 = vand.u32 2139095040, %v1070_v2  ;;  %v237_v20 = vand.u32 2147483647, %v1070_v2  ;;  %v1038_v34 = vmov 2475754826  }
  0x15   :  { %v36_v6 = vand.u32 8388607, %v29_v3  ;;  %v33_v8 = vshrl.u32 %v32_v4, 23  ;;  %v140_v11 = vand.u32 8388607, %v133_v5  ;;  %vm31_vm13 = vcmp.lt.s32.totalorder %v1066_v0, 0 }
  0x16   :  { %v137_v10 = vshrl.u32 %v136_v7, 23  ;;  %v241_v13 = vshrl.u32 %v240_v9, 23  ;;  %v1090_v30 = vand.u32 8388607, %v237_v20  ;;  %v1039_v36 = vmov 2131351028  }
  0x17   :  { %v884_v12 = vadd.s32 4294967169, %v33_v8  ;;  %v37_v14 = vor.u32 8388608, %v36_v6  ;;  %v141_v18 = vor.u32 8388608, %v140_v11  ;;  %v1040_v38 = vmov 2102212464   ;;  %s1043_s0 = smov [#allocation5]  }
  0x18   :  { %v888_v15 = vadd.s32 4294967169, %v137_v10  ;;  %v892_v17 = vadd.s32 4294967169, %v241_v13  ;;  %v1041_v40 = vmov 920167782   ;;  %v1042_v48 = vmov 1326507024  }
  0x19   :  { %v39_v16 = vadd.s32 1, %v884_v12  ;;  %v1082_v23 = vshll.u32 %v37_v14, 8  ;;  %v1086_v29 = vshll.u32 %v141_v18, 8  ;;  %vm135_vm14 = vcmp.lt.s32.totalorder %v1068_v1, 0  ;;  %s875_s18 = sshll.u32 %s1043_s0, 4  ;;  %s876_s18 = int_to_ptr.vmem [resolvable:$true] %s875_s18 }
  0x1a   :  { %v143_v19 = vadd.s32 1, %v888_v15  ;;  %v247_v21 = vadd.s32 1, %v892_v17  ;;  %s1010_s19 = scalar_lea.vmem %s876_s18, 1024  ;;  %p1015_p9 = scmp.lt.s32.totalorder %s876_s18, %s876_s18 }
  0x1b   :  { %vm40_vm0 = vcmp.gt.s32.totalorder %v39_v16, 0  ;;  %p1011_p8 = scmp.ne.s32.totalorder %s876_s18, %s1010_s19  ;;  %p1016_p10 = scmp.lt.s32.totalorder %s1010_s19, %s1010_s19 }
  0x1c   :  { %v41_v22 = vsel %vm40_vm0, %v39_v16, 0  ;;  %vm144_vm1 = vcmp.gt.s32.totalorder %v143_v19, 0  ;;  %vm248_vm2 = vcmp.gt.s32.totalorder %v247_v21, 0 }
  0x1d   :  { %v42_v24 = vshrl.u32 %v41_v22, 5  ;;  %v43_v25 = vand.u32 31, %v41_v22  ;;  %v145_v26 = vsel %vm144_vm1, %v143_v19, 0  ;;  %v1098_v42 = vsel %vm248_vm2, %v247_v21, 0  ;;  %p1017_p11 = por %p1016_p10, %p1015_p9 }
  0x1e   :  { %v1084_v27 = vshrl.u32 %v145_v26, 5  ;;  %v147_v28 = vand.u32 31, %v145_v26 }
  0x1f   :  { %v44_v31 = vsub.s32 32, %v43_v25  ;;  %v46_v33 = vshll.u32 %v1037_v32, %v43_v25  ;;  %v49_v35 = vshll.u32 %v1038_v34, %v43_v25  ;;  %v52_v37 = vshll.u32 %v1039_v36, %v43_v25  ;;  %p1018_p12 = pnand %p1017_p11, %p1011_p8 }
  0x20   :  { %v55_v39 = vshll.u32 %v1040_v38, %v43_v25  ;;  %v58_v41 = vshll.u32 %v1041_v40, %v43_v25  ;;  %vm61_vm3 = vcmp.lt.s32.totalorder %v42_v24, 1  ;;  %vm62_vm4 = vcmp.lt.s32.totalorder %v42_v24, 2 }
  0x21   :  { %v45_v43 = vshrl.u32 %v1037_v32, %v44_v31  ;;  %v47_v44 = vshrl.u32 %v1038_v34, %v44_v31  ;;  %v50_v45 = vshrl.u32 %v1039_v36, %v44_v31  ;;  %v53_v46 = vshrl.u32 %v1040_v38, %v44_v31 }
  0x22   :  { %v56_v47 = vshrl.u32 %v1041_v40, %v44_v31  ;;  %v59_v49 = vshrl.u32 %v1042_v48, %v44_v31  ;;  %vm64_vm5 = vcmp.lt.s32.totalorder %v42_v24, 4  ;;  %v148_v53 = vsub.s32 32, %v147_v28 }
  0x23   :  { %v48_v50 = vor.u32 %v47_v44, %v46_v33  ;;  %v51_v51 = vor.u32 %v50_v45, %v49_v35  ;;  %v54_v52 = vor.u32 %v53_v46, %v52_v37  ;;  %vm63_vm6 = vcmp.lt.s32.totalorder %v42_v24, 3 }
  0x24   :  { %v57_v54 = vor.u32 %v56_v47, %v55_v39  ;;  %v60_v55 = vor.u32 %v59_v49, %v58_v41  ;;  %v150_v56 = vshll.u32 %v1037_v32, %v147_v28  ;;  %v153_v4 = vshll.u32 %v1038_v34, %v147_v28  ;;  %v1139_v41 = vld [vmem:[#allocation2 + $0x18] sm:$0xff] }
  0x25   :  { %v65_v57 = vsel %vm61_vm3, %v45_v43, %v48_v50  ;;  %v66_v58 = vsel %vm64_vm5, %v54_v52, 2102212464  ;;  %v69_v59 = vsel %vm61_vm3, %v48_v50, %v51_v51  ;;  %v73_v60 = vsel %vm61_vm3, %v51_v51, %v54_v52 }
  0x26   :  { %v67_v61 = vsel %vm63_vm6, %v51_v51, %v66_v58  ;;  %v70_v62 = vsel %vm64_vm5, %v57_v54, 920167782  ;;  %v74_v63 = vsel %vm64_vm5, %v60_v55, 1326507024  ;;  %v149_v8 = vshrl.u32 %v1037_v32, %v148_v53 }
  0x27   :  { %v71_v6 = vsel %vm63_vm6, %v54_v52, %v70_v62  ;;  %v75_v7 = vsel %vm63_vm6, %v57_v54, %v74_v63  ;;  %v151_v9 = vshrl.u32 %v1038_v34, %v148_v53  ;;  %v68_v10 = vsel %vm62_vm4, %v65_v57, %v67_v61 }
  0x28   :  { %v72_v11 = vsel %vm62_vm4, %v69_v59, %v71_v6  ;;  %v76_v12 = vsel %vm62_vm4, %v73_v60, %v75_v7  ;;  %v154_v13 = vshrl.u32 %v1039_v36, %v148_v53  ;;  %v156_v21 = vshll.u32 %v1039_v36, %v147_v28 }
  0x29   :  { %v1118_v14 = vmul.u32.u64.low %v1082_v23, %v76_v12  ;;  %v1119_v15 = vmul.u32.u64.high %v1082_v23, %v76_v12, %v1118_v14  ;;  %v1122_v16 = vmul.u32.u64.low %v1082_v23, %v72_v11  ;;  %v1123_v17 = vmul.u32.u64.high %v1082_v23, %v72_v11, %v1122_v16 }
  0x2a   :  { %v152_v18 = vor.u32 %v151_v9, %v150_v56  ;;  %v155_v19 = vor.u32 %v154_v13, %v153_v4  ;;  %v157_v22 = vshrl.u32 %v1040_v38, %v148_v53  ;;  %v159_v24 = vshll.u32 %v1040_v38, %v147_v28 }
  0x2b   :  { %v160_v25 = vshrl.u32 %v1041_v40, %v148_v53  ;;  %v162_v26 = vshll.u32 %v1041_v40, %v147_v28  ;;  %v163_v31 = vshrl.u32 %v1042_v48, %v148_v53  ;;  %v84_v33 = vmul.u32 %v1082_v23, %v68_v10 }
  0x2c   :  { %v158_v35 = vor.u32 %v157_v22, %v156_v21  ;;  %vm165_vm7 = vcmp.lt.s32.totalorder %v1084_v27, 1  ;;  %vm166_vm8 = vcmp.lt.s32.totalorder %v1084_v27, 2  ;;  %vm86_vm9 = vc.u32 %v1119_v15, %v1122_v16 }
  0x2d   :  { %v87_v37 = vadd.s32 1, %v1123_v17  ;;  %v161_v39 = vor.u32 %v160_v25, %v159_v24  ;;  %vm167_vm10 = vcmp.lt.s32.totalorder %v1084_v27, 3  ;;  %v164_v28 = vor.u32 %v163_v31, %v162_v26 }
  0x2e   :  { %vm168_vm11 = vcmp.lt.s32.totalorder %v1084_v27, 4  ;;  %v169_v43 = vsel %vm165_vm7, %v149_v8, %v152_v18  ;;  %v173_v23 = vsel %vm165_vm7, %v152_v18, %v155_v19  ;;  %v177_v47 = vsel %vm165_vm7, %v155_v19, %v158_v35 }
  0x2f   :  { %v88_v44 = vsel %vm86_vm9, %v87_v37, %v1123_v17  ;;  %v170_v45 = vsel %vm168_vm11, %v158_v35, 2102212464  ;;  %v174_v46 = vsel %vm168_vm11, %v161_v39, 920167782  ;;  %v178_v52 = vsel %vm168_vm11, %v164_v28, 1326507024 }
  0x30   :  { %v89_v49 = vadd.s32 %v88_v44, %v84_v33  ;;  %v171_v50 = vsel %vm167_vm10, %v155_v19, %v170_v45  ;;  %v175_v51 = vsel %vm167_vm10, %v158_v35, %v174_v46  ;;  %v179_v55 = vsel %vm167_vm10, %v161_v39, %v178_v52 }
  0x31   :  { %v172_v53 = vsel %vm166_vm8, %v169_v43, %v171_v50  ;;  %v176_v54 = vsel %vm166_vm8, %v173_v23, %v175_v51  ;;  %v344_v56 = vand.u32 2139095040, %v1139_v41  ;;  %v180_v58 = vsel %vm166_vm8, %v177_v47, %v179_v55 }
  0x32   :  { %v90_v57 = vadd.s32 536870912, %v89_v49  ;;  %v1157_v59 = vmul.u32.u64.low %v1086_v29, %v176_v54  ;;  %v1158_v60 = vmul.u32.u64.high %v1086_v29, %v176_v54, %v1157_v59  ;;  %v251_v63 = vand.u32 31, %v1098_v42 }
  0x33   :  { %v1162_v61 = vmul.u32.u64.low %v1086_v29, %v180_v58  ;;  %v1163_v62 = vmul.u32.u64.high %v1086_v29, %v180_v58, %v1162_v61  ;;  %v188_v6 = vmul.u32 %v1086_v29, %v172_v53  ;;  %v245_v7 = vor.u32 8388608, %v1090_v30 }
  0x34   :  { %v91_v4 = vshrl.u32 %v90_v57, 30  ;;  %v252_v8 = vsub.s32 32, %v251_v63  ;;  %v341_v27 = vand.u32 2147483647, %v1139_v41  ;;  %v191_v10 = vadd.s32 1, %v1158_v60 }
  0x35   :  { %v254_v11 = vshll.u32 %v1037_v32, %v251_v63  ;;  %v345_v12 = vshrl.u32 %v344_v56, 23  ;;  %vm190_vm12 = vc.u32 %v1163_v62, %v1157_v59  ;;  %v257_v14 = vshll.u32 %v1038_v34, %v251_v63 }
  0x36   :  { %v92_v9 = vshll.u32 %v91_v4, 30  ;;  %v255_v13 = vshrl.u32 %v1038_v34, %v252_v8  ;;  %v260_v29 = vshll.u32 %v1039_v36, %v251_v63  ;;  %v192_v30 = vsel %vm190_vm12, %v191_v10, %v1158_v60 }
  0x37   :  { %v258_v18 = vshrl.u32 %v1039_v36, %v252_v8  ;;  %v263_v19 = vshll.u32 %v1040_v38, %v251_v63  ;;  %v193_v21 = vadd.s32 %v192_v30, %v188_v6  ;;  %v250_v22 = vshrl.u32 %v1098_v42, 5 }
  0x38   :  { %v1176_v17 = vsub.s32 %v89_v49, %v92_v9  ;;  %v261_v24 = vshrl.u32 %v1040_v38, %v252_v8  ;;  %v1184_v25 = vshll.u32 %v245_v7, 8  ;;  %v253_v31 = vshrl.u32 %v1037_v32, %v252_v8 }
  0x39   :  { %v264_v33 = vshrl.u32 %v1041_v40, %v252_v8  ;;  %v896_v35 = vadd.s32 4294967169, %v345_v12  ;;  %v194_v37 = vadd.s32 536870912, %v193_v21  ;;  %v256_v39 = vor.u32 %v255_v13, %v254_v11 }
  0x3a   :  { %v95_v26 = vsub.s32 0, %v1176_v17  ;;  %v266_v28 = vshll.u32 %v1041_v40, %v251_v63  ;;  %v267_v43 = vshrl.u32 %v1042_v48, %v252_v8  ;;  %v259_v42 = vor.u32 %v258_v18, %v257_v14 }
  0x3b   :  { %v262_v44 = vor.u32 %v261_v24, %v260_v29  ;;  %v265_v45 = vor.u32 %v264_v33, %v263_v19  ;;  %v195_v46 = vshrl.u32 %v194_v37, 30  ;;  %vm269_vm15 = vcmp.lt.s32.totalorder %v250_v22, 1 }
  0x3c   :  { %v885_v23 = vmin.u32 %v95_v26, %v1176_v17  ;;  %v268_v47 = vor.u32 %v267_v43, %v266_v28  ;;  %vm272_vm0 = vcmp.lt.s32.totalorder %v250_v22, 4  ;;  %v115_v50 = vsub.s32 4, %v91_v4 }
  0x3d   :  { %vm271_vm1 = vcmp.lt.s32.totalorder %v250_v22, 3  ;;  %v274_v51 = vsel %vm272_vm0, %v262_v44, 2102212464  ;;  %v196_v52 = vshll.u32 %v195_v46, 30  ;;  %v219_v53 = vsub.s32 4, %v195_v46 }
  0x3e   :  { %v97_v49 = vclz %v885_v23  ;;  %vm270_vm2 = vcmp.lt.s32.totalorder %v250_v22, 2  ;;  %v273_v54 = vsel %vm269_vm15, %v253_v31, %v256_v39  ;;  %v277_v56 = vsel %vm269_vm15, %v256_v39, %v259_v42 }
  0x3f   :  { %v278_v57 = vsel %vm272_vm0, %v265_v45, 920167782  ;;  %v281_v58 = vsel %vm269_vm15, %v259_v42, %v262_v44  ;;  %v197_v60 = vsub.s32 %v193_v21, %v196_v52  ;;  %v275_v61 = vsel %vm271_vm1, %v259_v42, %v274_v51 }
  0x40   :  { %v886_v55 = vadd.s32 4294967294, %v97_v49  ;;  %v279_v63 = vsel %vm271_vm1, %v262_v44, %v278_v57  ;;  %v282_v6 = vsel %vm272_vm0, %v268_v47, 1326507024  ;;  %v85_v7 = vadd.s32 %v1122_v16, %v1119_v15 }
  0x41   :  { %v116_v8 = vsel %vm31_vm13, %v115_v50, %v91_v4  ;;  %v283_v9 = vsel %vm271_vm1, %v265_v45, %v282_v6  ;;  %v199_v11 = vsub.s32 0, %v197_v60  ;;  %v280_v12 = vsel %vm270_vm2, %v277_v56, %v279_v63 }
  0x42   :  { %vm887_vm3 = vcmp.lt.s32.totalorder %v886_v55, 0  ;;  %v284_v13 = vsel %vm270_vm2, %v281_v58, %v283_v9  ;;  %v276_v18 = vsel %vm270_vm2, %v273_v54, %v275_v61  ;;  %v220_v15 = vsel %vm135_vm14, %v219_v53, %v195_v46 }
  0x43   :  { %v100_v10 = vsel %vm887_vm3, 0, %v886_v55  ;;  %v889_v19 = vmin.u32 %v199_v11, %v197_v60  ;;  %v1210_v16 = vmul.u32.u64.low %v1184_v25, %v284_v13  ;;  %v1211_v4 = vmul.u32.u64.high %v1184_v25, %v284_v13, %v1210_v16 }
  0x44   :  { %v101_v14 = vsub.s32 32, %v100_v10  ;;  %v102_v29 = vshll.u32 %v1176_v17, %v100_v10  ;;  %v105_v30 = vsub.s32 4294967266, %v100_v10  ;;  %vm1219_vm4 = vcmp.le.f32.partialorder %v29_v3, 0.7853982 }
  0x45   :  { %v1214_v26 = vmul.u32.u64.low %v1184_v25, %v280_v12  ;;  %v1215_v31 = vmul.u32.u64.high %v1184_v25, %v280_v12, %v1214_v26  ;;  %vm1225_vm5 = vcmp.le.f32.partialorder %v133_v5, 0.7853982  ;;  %v201_v33 = vclz %v889_v19 }
  0x46   :  { %v103_v21 = vshrl.u32 %v85_v7, %v101_v14  ;;  %v106_v24 = vadd.s32 127, %v105_v30  ;;  %v1231_v37 = vand.u32 8388607, %v341_v27  ;;  %v118_v43 = vsel %vm1219_vm4, 0, %v116_v8 }
  0x47   :  { %v351_v3 = vadd.s32 1, %v896_v35  ;;  %v890_v23 = vadd.s32 4294967294, %v201_v33  ;;  %v222_v42 = vsel %vm1225_vm5, 0, %v220_v15  ;;  %v292_v5 = vmul.u32 %v1184_v25, %v276_v18 }
  0x48   :  { %v104_v39 = vor.u32 %v103_v21, %v102_v29  ;;  %v107_v28 = vshll.u32 %v106_v24, 23  ;;  %vm294_vm6 = vc.u32 %v1211_v4, %v1214_v26  ;;  %v295_v46 = vadd.s32 1, %v1215_v31 }
  0x49   :  { %vm352_vm7 = vcmp.gt.s32.totalorder %v351_v3, 0  ;;  %v122_v47 = vadd.s32 3, %v118_v43  ;;  %v189_v49 = vadd.s32 %v1157_v59, %v1163_v62  ;;  %vm891_vm8 = vcmp.lt.s32.totalorder %v890_v23, 0 }
  0x4a   :  { %v108_v44 = vor.u32 4788187, %v107_v28  ;;  %v111_v45 = vcvt.s32.f32 %v104_v39  ;;  %v353_v50 = vsel %vm352_vm7, %v351_v3, 0  ;;  %v204_v51 = vsel %vm891_vm8, 0, %v890_v23 }
  0x4b   :  { %v226_v52 = vadd.s32 3, %v222_v42  ;;  %v296_v53 = vsel %vm294_vm6, %v295_v46, %v1215_v31  ;;  %v205_v54 = vsub.s32 32, %v204_v51  ;;  %v206_v25 = vshll.u32 %v197_v60, %v204_v51 }
  0x4c   :  { %v109_v35 = vand.u32 2147483647, %v108_v44  ;;  %v209_v55 = vsub.s32 4294967266, %v204_v51  ;;  %v297_v56 = vadd.s32 %v296_v53, %v292_v5  ;;  %v355_v58 = vand.u32 31, %v353_v50 }
  0x4d   :  { %v207_v61 = vshrl.u32 %v189_v49, %v205_v54  ;;  %v1243_v8 = vand.u32 3, %v122_v47  ;;  %v1245_v59 = vand.u32 3, %v226_v52  ;;  %v349_v12 = vor.u32 8388608, %v1231_v37 }
  0x4e   :  { %v112_v57 = vmul.f32 %v111_v45, %v109_v35  ;;  %v210_v63 = vadd.s32 127, %v209_v55  ;;  %v298_v6 = vadd.s32 536870912, %v297_v56  ;;  %v356_v62 = vsub.s32 32, %v355_v58 }
  0x4f   :  { %v208_v9 = vor.u32 %v207_v61, %v206_v25  ;;  %v1250_v13 = vshrl.u32 %v353_v50, 5  ;;  %v358_v14 = vshll.u32 %v1037_v32, %v355_v58  ;;  %vm239_vm9 = vcmp.lt.s32.totalorder %v1070_v2, 0  ;;  %v1287_v25 = vld [vmem:[#allocation2 + $0x20] sm:$0xff] }
  0x50   :  { %v113_v7 = vxor.u32 2147483648, %v112_v57  ;;  %v211_v10 = vshll.u32 %v210_v63, 23  ;;  %v299_v11 = vshrl.u32 %v298_v6, 30  ;;  %v359_v29 = vshrl.u32 %v1038_v34, %v356_v62 }
  0x51   :  { %v215_v19 = vcvt.s32.f32 %v208_v9  ;;  %v361_v16 = vshll.u32 %v1038_v34, %v355_v58  ;;  %v362_v21 = vshrl.u32 %v1039_v36, %v356_v62  ;;  %v364_v24 = vshll.u32 %v1039_v36, %v355_v58 }
  0x52   :  { %v114_v60 = vsel %vm31_vm13, %v113_v7, %v112_v57  ;;  %v212_v18 = vor.u32 4788187, %v211_v10  ;;  %v300_v15 = vshll.u32 %v299_v11, 30  ;;  %v365_v37 = vshrl.u32 %v1040_v38, %v356_v62 }
  0x53   :  { %v117_v30 = vsel %vm1219_vm4, %v1066_v0, %v114_v60  ;;  %vm128_vm10 = vcmp.eq.s32.totalorder %v1243_v8, 2  ;;  %v293_v17 = vadd.s32 %v1214_v26, %v1211_v4  ;;  %v367_v39 = vshll.u32 %v1040_v38, %v355_v58 }
  0x54   :  { %956 = vcosq.f32 %v117_v30  ;;  %v213_v31 = vand.u32 2147483647, %v212_v18  ;;  %v1261_v33 = vsub.s32 %v297_v56, %v300_v15  ;;  %v368_v28 = vshrl.u32 %v1041_v40, %v356_v62 }
  0x55   :  { %958 = vsinq.f32 %v117_v30  ;;  %v370_v43 = vshll.u32 %v1041_v40, %v355_v58  ;;  %vm125_vm11 = vcmp.eq.s32.totalorder %v1243_v8, 0  ;;  %v323_v42 = vsub.s32 4, %v299_v11 }
  0x56   :  { %v216_v3 = vmul.f32 %v215_v19, %v213_v31  ;;  %v303_v23 = vsub.s32 0, %v1261_v33  ;;  %v360_v5 = vor.u32 %v359_v29, %v358_v14  ;;  %vm124_vm12 = vcmp.lt.s32.totalorder %v1243_v8, 2 }
  0x57   :  { %v363_v44 = vor.u32 %v362_v21, %v361_v16  ;;  %v369_v45 = vor.u32 %v368_v28, %v367_v39  ;;  %v371_v46 = vshrl.u32 %v1042_v48, %v356_v62  ;;  %vm376_vm13 = vcmp.lt.s32.totalorder %v1250_v13, 4 }
  0x58   :  { %vm121_vm15 = vweird.f32 %v1066_v0  ;;  %v217_v4 = vxor.u32 2147483648, %v216_v3  ;;  %v893_v26 = vmin.u32 %v303_v23, %v1261_v33  ;;  %v366_v47 = vor.u32 %v365_v37, %v364_v24 }
  0x59   :  { %vm373_vm0 = vcmp.lt.s32.totalorder %v1250_v13, 1  ;;  %v357_v49 = vshrl.u32 %v1037_v32, %v356_v62  ;;  %v372_v50 = vor.u32 %v371_v46, %v370_v43  ;;  %vm375_vm1 = vcmp.lt.s32.totalorder %v1250_v13, 3 }
  0x5a   :  { %v1279_v35 = vshll.u32 %v349_v12, 8  ;;  %v218_v51 = vsel %vm135_vm14, %v217_v4, %v216_v3  ;;  %v305_v52 = vclz %v893_v26  ;;  %v378_v53 = vsel %vm376_vm13, %v366_v47, 2102212464 }
  0x5b   :  { %v382_v54 = vsel %vm376_vm13, %v369_v45, 920167782  ;;  %v221_v55 = vsel %vm1225_vm5, %v1068_v1, %v218_v51  ;;  %v324_v56 = vsel %vm239_vm9, %v323_v42, %v299_v11  ;;  %vm374_vm2 = vcmp.lt.s32.totalorder %v1250_v13, 2 }
  0x5c   :  { %v381_v57 = vsel %vm373_vm0, %v360_v5, %v363_v44  ;;  %960 = vcosq.f32 %v221_v55  ;;  %v894_v58 = vadd.s32 4294967294, %v305_v52  ;;  %v383_v61 = vsel %vm375_vm1, %v366_v47, %v382_v54 }
  0x5d   :  { %v385_v63 = vsel %vm373_vm0, %v363_v44, %v366_v47  ;;  %962 = vsinq.f32 %v221_v55  ;;  %v377_v22 = vsel %vm373_vm0, %v357_v49, %v360_v5  ;;  %v379_v7 = vsel %vm375_vm1, %v363_v44, %v378_v53  ;;  %v1349_v49 = vld [vmem:[#allocation2 + $0x28] sm:$0xff] }
  0x5e   :  { %v957_v6 = vpop.eup %956  ;;  %v386_v62 = vsel %vm376_vm13, %v372_v50, 1326507024  ;;  %vm895_vm14 = vcmp.lt.s32.totalorder %v894_v58, 0  ;;  %v448_v12 = vand.u32 2139095040, %v1287_v25  ;;  %v384_v29 = vsel %vm374_vm2, %v381_v57, %v383_v61 }
  0x5f   :  { %v959_v9 = vpop.eup %958  ;;  %v129_v10 = vxor.u32 2147483648, %v957_v6  ;;  %v387_v11 = vsel %vm375_vm1, %v369_v45, %v386_v62  ;;  %v308_v14 = vsel %vm895_vm14, 0, %v894_v58  ;;  %vm225_vm3 = vweird.f32 %v1068_v1 }
  0x60   :  { %v126_v60 = vxor.u32 2147483648, %v959_v9  ;;  %v388_v30 = vsel %vm374_vm2, %v385_v63, %v387_v11  ;;  %v309_v19 = vsub.s32 32, %v308_v14  ;;  %v310_v15 = vshll.u32 %v1261_v33, %v308_v14 }
  0x61   :  { %v130_v18 = vsel %vm128_vm10, %v129_v10, %v959_v9  ;;  %v313_v16 = vsub.s32 4294967266, %v308_v14  ;;  %v1321_v24 = vmul.u32.u64.low %v1279_v35, %v388_v30  ;;  %v1322_v31 = vmul.u32.u64.high %v1279_v35, %v388_v30, %v1321_v24 }
  0x62   :  { %v127_v21 = vsel %vm125_vm11, %v957_v6, %v126_v60  ;;  %v449_v37 = vshrl.u32 %v448_v12, 23  ;;  %v311_v28 = vshrl.u32 %v293_v17, %v309_v19  ;;  %v380_v3 = vsel %vm374_vm2, %v377_v22, %v379_v7 }
  0x63   :  { %v131_v39 = vsel %vm124_vm12, %v127_v21, %v130_v18  ;;  %v314_v43 = vadd.s32 127, %v313_v16  ;;  %v1331_v23 = vmul.u32.u64.low %v1279_v35, %v384_v29  ;;  %v1332_v42 = vmul.u32.u64.high %v1279_v35, %v384_v29, %v1331_v23 }
  0x64   :  { %v132_v33 = vsel %vm121_vm15, nan, %v131_v39  ;;  %v900_v5 = vadd.s32 4294967169, %v449_v37  ;;  %vm1337_vm4 = vcmp.le.f32.partialorder %v237_v20, 0.7853982  ;;  %v312_v8 = vor.u32 %v311_v28, %v310_v15 }
  0x65   :  { %v315_v17 = vshll.u32 %v314_v43, 23  ;;  %v445_v13 = vand.u32 2147483647, %v1287_v25  ;;  %861 = vst [vmem:[#allocation5] sm:$0xff] %v132_v33  ;;  %vm228_vm5 = vcmp.lt.s32.totalorder %v1245_v59, 2  ;;  %vm232_vm6 = vcmp.eq.s32.totalorder %v1245_v59, 2 }
  0x66   :  { %v326_v0 = vsel %vm1337_vm4, 0, %v324_v56  ;;  %v455_v45 = vadd.s32 1, %v900_v5  ;;  %v961_v46 = vpop.eup %960  ;;  %v319_v26 = vcvt.s32.f32 %v312_v8  ;;  %v396_v20 = vmul.u32 %v1279_v35, %v380_v3 }
  0x67   :  { %v316_v4 = vor.u32 4788187, %v315_v17  ;;  %vm398_vm7 = vc.u32 %v1322_v31, %v1331_v23  ;;  %v963_v47 = vpop.eup %962  ;;  %vm229_vm8 = vcmp.eq.s32.totalorder %v1245_v59, 0  ;;  %v233_v50 = vxor.u32 2147483648, %v961_v46 }
  0x68   :  { %v399_v51 = vadd.s32 1, %v1332_v42  ;;  %vm456_vm10 = vcmp.gt.s32.totalorder %v455_v45, 0  ;;  %v230_v52 = vxor.u32 2147483648, %v963_v47  ;;  %v330_v54 = vadd.s32 3, %v326_v0 }
  0x69   :  { %v317_v53 = vand.u32 2147483647, %v316_v4  ;;  %v457_v55 = vsel %vm456_vm10, %v455_v45, 0  ;;  %v234_v56 = vsel %vm232_vm6, %v233_v50, %v963_v47  ;;  %v452_v57 = vand.u32 8388607, %v445_v13 }
  0x6a   :  { %v400_v35 = vsel %vm398_vm7, %v399_v51, %v1332_v42  ;;  %v459_v58 = vand.u32 31, %v457_v55  ;;  %v231_v61 = vsel %vm229_vm8, %v961_v46, %v230_v52  ;;  %v552_v22 = vand.u32 2139095040, %v1349_v49 }
  0x6b   :  { %v320_v63 = vmul.f32 %v319_v26, %v317_v53  ;;  %v401_v6 = vadd.s32 %v400_v35, %v396_v20  ;;  %v235_v7 = vsel %vm228_vm5, %v231_v61, %v234_v56  ;;  %v458_v62 = vshrl.u32 %v457_v55, 5 }
  0x6c   :  { %v460_v9 = vsub.s32 32, %v459_v58  ;;  %v462_v10 = vshll.u32 %v1037_v32, %v459_v58  ;;  %v236_v11 = vsel %vm225_vm3, nan, %v235_v7  ;;  %v465_v14 = vshll.u32 %v1038_v34, %v459_v58 }
  0x6d   :  { %v321_v12 = vxor.u32 2147483648, %v320_v63  ;;  %v402_v60 = vadd.s32 536870912, %v401_v6  ;;  %v468_v18 = vshll.u32 %v1039_v36, %v459_v58  ;;  %862 = vst [vmem:[#allocation5 + $0x8] sm:$0xff] %v236_v11  ;;  %v471_v1 = vshll.u32 %v1040_v38, %v459_v58 }
  0x6e   :  { %v463_v29 = vshrl.u32 %v1038_v34, %v460_v9  ;;  %v466_v30 = vshrl.u32 %v1039_v36, %v460_v9  ;;  %v469_v59 = vshrl.u32 %v1040_v38, %v460_v9  ;;  %v472_v16 = vshrl.u32 %v1041_v40, %v460_v9 }
  0x6f   :  { %v322_v19 = vsel %vm239_vm9, %v321_v12, %v320_v63  ;;  %v403_v15 = vshrl.u32 %v402_v60, 30  ;;  %v453_v24 = vor.u32 8388608, %v452_v57  ;;  %v461_v37 = vshrl.u32 %v1037_v32, %v460_v9 }
  0x70   :  { %v325_v21 = vsel %vm1337_vm4, %v1070_v2, %v322_v19  ;;  %v464_v39 = vor.u32 %v463_v29, %v462_v10  ;;  %v467_v43 = vor.u32 %v466_v30, %v465_v14  ;;  %v473_v3 = vor.u32 %v472_v16, %v471_v1 }
  0x71   :  { %964 = vcosq.f32 %v325_v21  ;;  %v404_v28 = vshll.u32 %v403_v15, 30  ;;  %v474_v33 = vshll.u32 %v1041_v40, %v459_v58  ;;  %v475_v42 = vshrl.u32 %v1042_v48, %v460_v9 }
  0x72   :  { %966 = vsinq.f32 %v325_v21  ;;  %vm477_vm9 = vcmp.lt.s32.totalorder %v458_v62, 1  ;;  %v331_v5 = vand.u32 3, %v330_v54  ;;  %vm343_vm11 = vcmp.lt.s32.totalorder %v1139_v41, 0 }
  0x73   :  { %v1380_v8 = vsub.s32 %v401_v6, %v404_v28  ;;  %v470_v44 = vor.u32 %v469_v59, %v468_v18  ;;  %v553_v17 = vshrl.u32 %v552_v22, 23  ;;  %v476_v0 = vor.u32 %v475_v42, %v474_v33 }
  0x74   :  { %vm479_vm12 = vcmp.lt.s32.totalorder %v458_v62, 3  ;;  %vm480_vm13 = vcmp.lt.s32.totalorder %v458_v62, 4  ;;  %v493_v45 = vshll.u32 %v453_v24, 8  ;;  %vm478_vm15 = vcmp.lt.s32.totalorder %v458_v62, 2 }
  0x75   :  { %v407_v46 = vsub.s32 0, %v1380_v8  ;;  %v482_v4 = vsel %vm480_vm13, %v470_v44, 2102212464  ;;  %v485_v26 = vsel %vm477_vm9, %v464_v39, %v467_v43  ;;  %vm329_vm0 = vweird.f32 %v1070_v2 }
  0x76   :  { %v481_v20 = vsel %vm477_vm9, %v461_v37, %v464_v39  ;;  %v483_v47 = vsel %vm479_vm12, %v467_v43, %v482_v4  ;;  %v486_v50 = vsel %vm480_vm13, %v473_v3, 920167782  ;;  %v490_v51 = vsel %vm480_vm13, %v476_v0, 1326507024 }
  0x77   :  { %v897_v52 = vmin.u32 %v407_v46, %v1380_v8  ;;  %v487_v53 = vsel %vm479_vm12, %v470_v44, %v486_v50  ;;  %v489_v54 = vsel %vm477_vm9, %v467_v43, %v470_v44  ;;  %v904_v55 = vadd.s32 4294967169, %v553_v17 }
  0x78   :  { %vm332_vm1 = vcmp.lt.s32.totalorder %v331_v5, 2  ;;  %v427_v56 = vsub.s32 4, %v403_v15  ;;  %v488_v35 = vsel %vm478_vm15, %v485_v26, %v487_v53  ;;  %v491_v57 = vsel %vm479_vm12, %v473_v3, %v490_v51 }
  0x79   :  { %vm333_vm2 = vcmp.eq.s32.totalorder %v331_v5, 0  ;;  %v409_v58 = vclz %v897_v52  ;;  %v484_v61 = vsel %vm478_vm15, %v481_v20, %v483_v47  ;;  %v549_v63 = vand.u32 2147483647, %v1349_v49 }
  0x7a   :  { %vm336_vm14 = vcmp.eq.s32.totalorder %v331_v5, 2  ;;  %v492_v6 = vsel %vm478_vm15, %v489_v54, %v491_v57  ;;  %v1395_v22 = vmul.u32.u64.low %v493_v45, %v488_v35  ;;  %v1396_v7 = vmul.u32.u64.high %v493_v45, %v488_v35, %v1395_v22 }
  0x7b   :  { %v965_v9 = vpop.eup %964  ;;  %v898_v10 = vadd.s32 4294967294, %v409_v58  ;;  %v1399_v11 = vmul.u32.u64.low %v493_v45, %v492_v6  ;;  %v1400_v12 = vmul.u32.u64.high %v493_v45, %v492_v6, %v1399_v11  ;;  %v559_v60 = vadd.s32 1, %v904_v55 }
  0x7c   :  { %v967_v14 = vpop.eup %966  ;;  %v337_v29 = vxor.u32 2147483648, %v965_v9  ;;  %v397_v30 = vadd.s32 %v1331_v23, %v1322_v31  ;;  %v1406_v18 = vsel %vm343_vm11, %v427_v56, %v403_v15  ;;  %v500_v62 = vmul.u32 %v493_v45, %v484_v61 }
  0x7d   :  { %v334_v59 = vxor.u32 2147483648, %v967_v14  ;;  %vm899_vm3 = vcmp.lt.s32.totalorder %v898_v10, 0  ;;  %v556_v19 = vand.u32 8388607, %v549_v63  ;;  %vm560_vm4 = vcmp.gt.s32.totalorder %v559_v60, 0 }
  0x7e   :  { %v338_v1 = vsel %vm336_vm14, %v337_v29, %v967_v14  ;;  %v412_v16 = vsel %vm899_vm3, 0, %v898_v10  ;;  %v503_v21 = vadd.s32 1, %v1396_v7  ;;  %v561_v24 = vsel %vm560_vm4, %v559_v60, 0 }
  0x7f   :  { %v335_v37 = vsel %vm333_vm2, %v965_v9, %v334_v59  ;;  %v413_v31 = vsub.s32 32, %v412_v16  ;;  %v414_v23 = vshll.u32 %v1380_v8, %v412_v16  ;;  %v417_v15 = vsub.s32 4294967266, %v412_v16 }
  0x80   :  { %v339_v39 = vsel %vm332_vm1, %v335_v37, %v338_v1  ;;  %vm1417_vm5 = vcmp.le.f32.partialorder %v341_v27, 0.7853982  ;;  %vm502_vm6 = vc.u32 %v1400_v12, %v1395_v22  ;;  %v1423_v43 = vshrl.u32 %v561_v24, 5 }
  0x81   :  { %v340_v3 = vsel %vm329_vm0, nan, %v339_v39  ;;  %v415_v33 = vshrl.u32 %v397_v30, %v413_v31  ;;  %v418_v42 = vadd.s32 127, %v417_v15  ;;  %v504_v8 = vsel %vm502_vm6, %v503_v21, %v1396_v7 }
  0x82   :  { %v430_v5 = vsel %vm1417_vm5, 0, %v1406_v18  ;;  %v505_v27 = vadd.s32 %v504_v8, %v500_v62  ;;  %v563_v44 = vand.u32 31, %v561_v24  ;;  %863 = vst [vmem:[#allocation5 + $0x10] sm:$0xff] %v340_v3  ;;  %v557_v45 = vor.u32 8388608, %v556_v19 }
  0x83   :  { %v416_v17 = vor.u32 %v415_v33, %v414_v23  ;;  %v419_v0 = vshll.u32 %v418_v42, 23  ;;  %vm581_vm7 = vcmp.lt.s32.totalorder %v1423_v43, 1  ;;  %vm584_vm8 = vcmp.lt.s32.totalorder %v1423_v43, 4  ;;  %v1471_v33 = vld [vmem:[#allocation2 + $0x30] sm:$0xff] }
  0x84   :  { %v506_v46 = vadd.s32 536870912, %v505_v27  ;;  %v564_v4 = vsub.s32 32, %v563_v44  ;;  %v566_v2 = vshll.u32 %v1037_v32, %v563_v44  ;;  %v569_v26 = vshll.u32 %v1038_v34, %v563_v44 }
  0x85   :  { %v420_v20 = vor.u32 4788187, %v419_v0  ;;  %v423_v47 = vcvt.s32.f32 %v416_v17  ;;  %v572_v50 = vshll.u32 %v1039_v36, %v563_v44  ;;  %v575_v51 = vshll.u32 %v1040_v38, %v563_v44 }
  0x86   :  { %v507_v52 = vshrl.u32 %v506_v46, 30  ;;  %v567_v53 = vshrl.u32 %v1038_v34, %v564_v4  ;;  %v570_v54 = vshrl.u32 %v1039_v36, %v564_v4  ;;  %v573_v56 = vshrl.u32 %v1040_v38, %v564_v4 }
  0x87   :  { %v421_v55 = vand.u32 2147483647, %v420_v20  ;;  %v576_v35 = vshrl.u32 %v1041_v40, %v564_v4  ;;  %v578_v57 = vshll.u32 %v1041_v40, %v563_v44  ;;  %v565_v61 = vshrl.u32 %v1037_v32, %v564_v4 }
  0x88   :  { %v508_v58 = vshll.u32 %v507_v52, 30  ;;  %v568_v6 = vor.u32 %v567_v53, %v566_v2  ;;  %v571_v7 = vor.u32 %v570_v54, %v569_v26  ;;  %v574_v10 = vor.u32 %v573_v56, %v572_v50 }
  0x89   :  { %v424_v9 = vmul.f32 %v423_v47, %v421_v55  ;;  %v577_v11 = vor.u32 %v576_v35, %v575_v51  ;;  %v579_v60 = vshrl.u32 %v1042_v48, %v564_v4  ;;  %vm582_vm10 = vcmp.lt.s32.totalorder %v1423_v43, 2 }
  0x8a   :  { %v1444_v14 = vsub.s32 %v505_v27, %v508_v58  ;;  %vm583_vm9 = vcmp.lt.s32.totalorder %v1423_v43, 3  ;;  %v597_v29 = vshll.u32 %v557_v45, 8  ;;  %v586_v62 = vsel %vm584_vm8, %v574_v10, 2102212464 }
  0x8b   :  { %v425_v30 = vxor.u32 2147483648, %v424_v9  ;;  %v580_v18 = vor.u32 %v579_v60, %v578_v57  ;;  %v589_v59 = vsel %vm581_vm7, %v568_v6, %v571_v7  ;;  %v434_v19 = vadd.s32 3, %v430_v5 }
  0x8c   :  { %v511_v1 = vsub.s32 0, %v1444_v14  ;;  %v590_v16 = vsel %vm584_vm8, %v577_v11, 920167782  ;;  %v585_v24 = vsel %vm581_vm7, %v565_v61, %v568_v6  ;;  %v587_v37 = vsel %vm583_vm9, %v571_v7, %v586_v62 }
  0x8d   :  { %v426_v21 = vsel %vm343_vm11, %v425_v30, %v424_v9  ;;  %v591_v31 = vsel %vm583_vm9, %v574_v10, %v590_v16  ;;  %v593_v3 = vsel %vm581_vm7, %v571_v7, %v574_v10  ;;  %v594_v42 = vsel %vm584_vm8, %v580_v18, 1326507024 }
  0x8e   :  { %v429_v23 = vsel %vm1417_vm5, %v1139_v41, %v426_v21  ;;  %v901_v15 = vmin.u32 %v511_v1, %v1444_v14  ;;  %v592_v39 = vsel %vm582_vm10, %v589_v59, %v591_v31  ;;  %v531_v27 = vsub.s32 4, %v507_v52 }
  0x8f   :  { %968 = vcosq.f32 %v429_v23  ;;  %v1475_v8 = vmul.u32.u64.low %v597_v29, %v592_v39  ;;  %v1476_v5 = vmul.u32.u64.high %v597_v29, %v592_v39, %v1475_v8  ;;  %v595_v44 = vsel %vm583_vm9, %v577_v11, %v594_v42 }
  0x90   :  { %970 = vsinq.f32 %v429_v23  ;;  %v513_v28 = vclz %v901_v15  ;;  %v588_v0 = vsel %vm582_vm10, %v585_v24, %v587_v37  ;;  %v596_v45 = vsel %vm582_vm10, %v593_v3, %v595_v44 }
  0x91   :  { %v656_v46 = vand.u32 2139095040, %v1471_v33  ;;  %v435_v4 = vand.u32 3, %v434_v19  ;;  %vm447_vm11 = vcmp.lt.s32.totalorder %v1287_v25, 0  ;;  %v501_v20 = vadd.s32 %v1395_v22, %v1400_v12 }
  0x92   :  { %v902_v17 = vadd.s32 4294967294, %v513_v28  ;;  %v1487_v2 = vmul.u32.u64.low %v597_v29, %v596_v45  ;;  %v1488_v26 = vmul.u32.u64.high %v597_v29, %v596_v45, %v1487_v2  ;;  %v607_v47 = vadd.s32 1, %v1476_v5 }
  0x93   :  { %v657_v50 = vshrl.u32 %v656_v46, 23  ;;  %v532_v43 = vsel %vm447_vm11, %v531_v27, %v507_v52  ;;  %v604_v53 = vmul.u32 %v597_v29, %v588_v0  ;;  %v653_v54 = vand.u32 2147483647, %v1471_v33  ;;  %v1511_v29 = vld [vmem:[#allocation2 + $0x38] sm:$0xff] }
  0x94   :  { %vm903_vm12 = vcmp.lt.s32.totalorder %v902_v17, 0  ;;  %vm433_vm13 = vweird.f32 %v1139_v41  ;;  %vm437_vm15 = vcmp.eq.s32.totalorder %v435_v4, 0  ;;  %vm1500_vm0 = vcmp.le.f32.partialorder %v445_v13, 0.7853982 }
  0x95   :  { %v516_v51 = vsel %vm903_vm12, 0, %v902_v17  ;;  %v908_v57 = vadd.s32 4294967169, %v657_v50  ;;  %vm606_vm1 = vc.u32 %v1488_v26, %v1475_v8  ;;  %vm440_vm2 = vcmp.eq.s32.totalorder %v435_v4, 2 }
  0x96   :  { %v517_v55 = vsub.s32 32, %v516_v51  ;;  %v518_v56 = vshll.u32 %v1444_v14, %v516_v51  ;;  %v521_v35 = vsub.s32 4294967266, %v516_v51  ;;  %v608_v58 = vsel %vm606_vm1, %v607_v47, %v1476_v5 }
  0x97   :  { %v663_v61 = vadd.s32 1, %v908_v57  ;;  %v534_v7 = vsel %vm1500_vm0, 0, %v532_v43  ;;  %v609_v9 = vadd.s32 %v608_v58, %v604_v53  ;;  %v660_v13 = vand.u32 8388607, %v653_v54 }
  0x98   :  { %v519_v12 = vshrl.u32 %v501_v20, %v517_v55  ;;  %v522_v52 = vadd.s32 127, %v521_v35  ;;  %vm436_vm3 = vcmp.lt.s32.totalorder %v435_v4, 2  ;;  %v538_v16 = vadd.s32 3, %v534_v7 }
  0x99   :  { %v969_v6 = vpop.eup %968  ;;  %vm664_vm14 = vcmp.gt.s32.totalorder %v663_v61, 0  ;;  %v610_v18 = vadd.s32 536870912, %v609_v9  ;;  %v661_v37 = vor.u32 8388608, %v660_v13  ;;  %v760_v39 = vand.u32 2139095040, %v1511_v29 }
  0x9a   :  { %v971_v10 = vpop.eup %970  ;;  %v441_v11 = vxor.u32 2147483648, %v969_v6  ;;  %v520_v60 = vor.u32 %v519_v12, %v518_v56  ;;  %v523_v14 = vshll.u32 %v522_v52, 23  ;;  %v665_v62 = vsel %vm664_vm14, %v663_v61, 0 }
  0x9b   :  { %v438_v30 = vxor.u32 2147483648, %v971_v10  ;;  %v1514_v24 = vshrl.u32 %v610_v18, 30  ;;  %v667_v31 = vand.u32 31, %v665_v62  ;;  %v666_v5 = vshrl.u32 %v665_v62, 5 }
  0x9c   :  { %v442_v59 = vsel %vm440_vm2, %v441_v11, %v971_v10  ;;  %v524_v19 = vor.u32 4788187, %v523_v14  ;;  %v527_v1 = vcvt.s32.f32 %v520_v60  ;;  %v1520_v44 = vand.u32 3, %v538_v16 }
  0x9d   :  { %v439_v21 = vsel %vm437_vm15, %v969_v6, %v438_v30  ;;  %v612_v42 = vshll.u32 %v1514_v24, 30  ;;  %v668_v28 = vsub.s32 32, %v667_v31  ;;  %v670_v17 = vshll.u32 %v1037_v32, %v667_v31 }
  0x9e   :  { %v443_v23 = vsel %vm436_vm3, %v439_v21, %v442_v59  ;;  %v525_v15 = vand.u32 2147483647, %v524_v19  ;;  %v757_v0 = vand.u32 2147483647, %v1511_v29  ;;  %v673_v4 = vshll.u32 %v1038_v34, %v667_v31 }
  0x9f   :  { %v444_v3 = vsel %vm433_vm13, nan, %v443_v23  ;;  %v1524_v45 = vsub.s32 %v609_v9, %v612_v42  ;;  %v671_v46 = vshrl.u32 %v1038_v34, %v668_v28  ;;  %v1528_v41 = vshll.u32 %v661_v37, 8 }
  0xa0   :  { %v528_v27 = vmul.f32 %v527_v1, %v525_v15  ;;  %864 = vst [vmem:[#allocation5 + $0x18] sm:$0xff] %v444_v3  ;;  %v674_v20 = vshrl.u32 %v1039_v36, %v668_v28  ;;  %v676_v47 = vshll.u32 %v1039_v36, %v667_v31  ;;  %v677_v50 = vshrl.u32 %v1040_v38, %v668_v28 }
  0xa1   :  { %v615_v51 = vsub.s32 0, %v1524_v45  ;;  %v679_v43 = vshll.u32 %v1040_v38, %v667_v31  ;;  %vm685_vm4 = vcmp.lt.s32.totalorder %v666_v5, 1  ;;  %v761_v53 = vshrl.u32 %v760_v39, 23 }
  0xa2   :  { %v529_v2 = vxor.u32 2147483648, %v528_v27  ;;  %v669_v56 = vshrl.u32 %v1037_v32, %v668_v28  ;;  %v672_v35 = vor.u32 %v671_v46, %v670_v17  ;;  %v680_v57 = vshrl.u32 %v1041_v40, %v668_v28 }
  0xa3   :  { %v905_v52 = vmin.u32 %v615_v51, %v1524_v45  ;;  %v675_v58 = vor.u32 %v674_v20, %v673_v4  ;;  %v682_v61 = vshll.u32 %v1041_v40, %v667_v31  ;;  %v678_v6 = vor.u32 %v677_v50, %v676_v47 }
  0xa4   :  { %v530_v55 = vsel %vm447_vm11, %v529_v2, %v528_v27  ;;  %v681_v7 = vor.u32 %v680_v57, %v679_v43  ;;  %v683_v9 = vshrl.u32 %v1042_v48, %v668_v28  ;;  %vm687_vm5 = vcmp.lt.s32.totalorder %v666_v5, 3 }
  0xa5   :  { %v533_v12 = vsel %vm1500_vm0, %v1287_v25, %v530_v55  ;;  %v617_v13 = vclz %v905_v52  ;;  %v912_v10 = vadd.s32 4294967169, %v761_v53  ;;  %vm686_vm6 = vcmp.lt.s32.totalorder %v666_v5, 2 }
  0xa6   :  { %972 = vcosq.f32 %v533_v12  ;;  %v684_v11 = vor.u32 %v683_v9, %v682_v61  ;;  %vm688_vm7 = vcmp.lt.s32.totalorder %v666_v5, 4  ;;  %v689_v22 = vsel %vm685_vm4, %v669_v56, %v672_v35 }
  0xa7   :  { %974 = vsinq.f32 %v533_v12  ;;  %v906_v60 = vadd.s32 4294967294, %v617_v13  ;;  %v690_v14 = vsel %vm688_vm7, %v678_v6, 2102212464  ;;  %v693_v30 = vsel %vm685_vm4, %v672_v35, %v675_v58 }
  0xa8   :  { %v694_v18 = vsel %vm688_vm7, %v681_v7, 920167782  ;;  %v691_v62 = vsel %vm687_vm5, %v675_v58, %v690_v14  ;;  %v697_v19 = vsel %vm685_vm4, %v675_v58, %v678_v6  ;;  %v698_v1 = vsel %vm688_vm7, %v684_v11, 1326507024 }
  0xa9   :  { %v695_v59 = vsel %vm687_vm5, %v678_v6, %v694_v18  ;;  %vm537_vm8 = vweird.f32 %v1287_v25  ;;  %vm551_vm10 = vcmp.lt.s32.totalorder %v1349_v49, 0  ;;  %v605_v16 = vadd.s32 %v1475_v8, %v1488_v26 }
  0xaa   :  { %vm907_vm9 = vcmp.lt.s32.totalorder %v906_v60, 0  ;;  %v696_v21 = vsel %vm686_vm6, %v693_v30, %v695_v59  ;;  %v699_v37 = vsel %vm687_vm5, %v681_v7, %v698_v1  ;;  %v692_v27 = vsel %vm686_vm6, %v689_v22, %v691_v62 }
  0xab   :  { %v620_v31 = vsel %vm907_vm9, 0, %v906_v60  ;;  %v700_v23 = vsel %vm686_vm6, %v697_v19, %v699_v37  ;;  %v1558_v15 = vmul.u32.u64.low %v1528_v41, %v696_v21  ;;  %v1559_v39 = vmul.u32.u64.high %v1528_v41, %v696_v21, %v1558_v15 }
  0xac   :  { %v621_v3 = vsub.s32 32, %v620_v31  ;;  %v622_v42 = vshll.u32 %v1524_v45, %v620_v31  ;;  %v625_v28 = vsub.s32 4294967266, %v620_v31  ;;  %vm541_vm11 = vcmp.eq.s32.totalorder %v1520_v44, 0 }
  0xad   :  { %v1566_v8 = vmul.u32.u64.low %v1528_v41, %v700_v23  ;;  %v1567_v26 = vmul.u32.u64.high %v1528_v41, %v700_v23, %v1566_v8  ;;  %v767_v17 = vadd.s32 1, %v912_v10  ;;  %vm544_vm12 = vcmp.eq.s32.totalorder %v1520_v44, 2 }
  0xae   :  { %v623_v46 = vshrl.u32 %v605_v16, %v621_v3  ;;  %v626_v4 = vadd.s32 127, %v625_v28  ;;  %v1572_v2 = vand.u32 8388607, %v757_v0  ;;  %v635_v45 = vsub.s32 4, %v1514_v24 }
  0xaf   :  { %v708_v5 = vmul.u32 %v1528_v41, %v692_v27  ;;  %v711_v47 = vadd.s32 1, %v1559_v39  ;;  %vm768_vm13 = vcmp.gt.s32.totalorder %v767_v17, 0  ;;  %vm540_vm15 = vcmp.lt.s32.totalorder %v1520_v44, 2 }
  0xb0   :  { %v973_v20 = vpop.eup %972  ;;  %v624_v43 = vor.u32 %v623_v46, %v622_v42  ;;  %v627_v53 = vshll.u32 %v626_v4, 23  ;;  %v769_v55 = vsel %vm768_vm13, %v767_v17, 0  ;;  %vm1580_vm0 = vcmp.le.f32.partialorder %v549_v63, 0.7853982 }
  0xb1   :  { %v975_v50 = vpop.eup %974  ;;  %v545_v51 = vxor.u32 2147483648, %v973_v20  ;;  %vm710_vm1 = vc.u32 %v1567_v26, %v1558_v15  ;;  %v636_v63 = vsel %vm551_vm10, %v635_v45, %v1514_v24  ;;  %v771_v6 = vand.u32 31, %v769_v55 }
  0xb2   :  { %v542_v56 = vxor.u32 2147483648, %v975_v50  ;;  %v628_v57 = vor.u32 4788187, %v627_v53  ;;  %v631_v12 = vcvt.s32.f32 %v624_v43  ;;  %v712_v52 = vsel %vm710_vm1, %v711_v47, %v1559_v39 }
  0xb3   :  { %v546_v41 = vsel %vm544_vm12, %v545_v51, %v975_v50  ;;  %v713_v61 = vadd.s32 %v712_v52, %v708_v5  ;;  %v765_v13 = vor.u32 8388608, %v1572_v2  ;;  %v770_v10 = vshrl.u32 %v769_v55, 5 }
  0xb4   :  { %v543_v58 = vsel %vm541_vm11, %v973_v20, %v542_v56  ;;  %v629_v9 = vand.u32 2147483647, %v628_v57  ;;  %v772_v60 = vsub.s32 32, %v771_v6  ;;  %v774_v14 = vshll.u32 %v1037_v32, %v771_v6 }
  0xb5   :  { %v547_v7 = vsel %vm540_vm15, %v543_v58, %v546_v41  ;;  %v714_v22 = vadd.s32 536870912, %v713_v61  ;;  %v638_v30 = vsel %vm1580_vm0, 0, %v636_v63  ;;  %v777_v24 = vshll.u32 %v1038_v34, %v771_v6 }
  0xb6   :  { %v548_v11 = vsel %vm537_vm8, nan, %v547_v7  ;;  %v632_v44 = vmul.f32 %v631_v12, %v629_v9  ;;  %v783_v18 = vshll.u32 %v1040_v38, %v771_v6  ;;  %v775_v59 = vshrl.u32 %v1038_v34, %v772_v60 }
  0xb7   :  { %865 = vst [vmem:[#allocation5 + $0x20] sm:$0xff] %v548_v11  ;;  %v1602_v62 = vshrl.u32 %v714_v22, 30  ;;  %v778_v25 = vshrl.u32 %v1039_v36, %v772_v60  ;;  %v780_v19 = vshll.u32 %v1039_v36, %v771_v6  ;;  %v781_v16 = vshrl.u32 %v1040_v38, %v772_v60 }
  0xb8   :  { %v633_v1 = vxor.u32 2147483648, %v632_v44  ;;  %v784_v21 = vshrl.u32 %v1041_v40, %v772_v60  ;;  %v786_v37 = vshll.u32 %v1041_v40, %v771_v6  ;;  %v773_v23 = vshrl.u32 %v1037_v32, %v772_v60 }
  0xb9   :  { %v716_v31 = vshll.u32 %v1602_v62, 30  ;;  %v776_v39 = vor.u32 %v775_v59, %v774_v14  ;;  %vm789_vm2 = vcmp.lt.s32.totalorder %v770_v10, 1  ;;  %v779_v3 = vor.u32 %v778_v25, %v777_v24 }
  0xba   :  { %v634_v34 = vsel %vm551_vm10, %v633_v1, %v632_v44  ;;  %v785_v42 = vor.u32 %v784_v21, %v783_v18  ;;  %v787_v36 = vshrl.u32 %v1042_v48, %v772_v60  ;;  %v782_v27 = vor.u32 %v781_v16, %v780_v19 }
  0xbb   :  { %v637_v38 = vsel %vm1580_vm0, %v1349_v49, %v634_v34  ;;  %v717_v28 = vsub.s32 %v713_v61, %v716_v31  ;;  %vm792_vm14 = vcmp.lt.s32.totalorder %v770_v10, 4  ;;  %v642_v40 = vadd.s32 3, %v638_v30 }
  0xbc   :  { %976 = vcosq.f32 %v637_v38  ;;  %v788_v8 = vor.u32 %v787_v36, %v786_v37  ;;  %vm791_vm3 = vcmp.lt.s32.totalorder %v770_v10, 3  ;;  %vm790_vm4 = vcmp.lt.s32.totalorder %v770_v10, 2 }
  0xbd   :  { %978 = vsinq.f32 %v637_v38  ;;  %v719_v32 = vsub.s32 0, %v717_v28  ;;  %v794_v17 = vsel %vm792_vm14, %v782_v27, 2102212464  ;;  %v797_v46 = vsel %vm789_vm2, %v776_v39, %v779_v3 }
  0xbe   :  { %v798_v48 = vsel %vm792_vm14, %v785_v42, 920167782  ;;  %v805_v4 = vshll.u32 %v765_v13, 8  ;;  %v793_v20 = vsel %vm789_vm2, %v773_v23, %v776_v39  ;;  %v795_v5 = vsel %vm791_vm3, %v779_v3, %v794_v17 }
  0xbf   :  { %v909_v2 = vmin.u32 %v719_v32, %v717_v28  ;;  %v799_v45 = vsel %vm791_vm3, %v782_v27, %v798_v48  ;;  %v801_v50 = vsel %vm789_vm2, %v779_v3, %v782_v27  ;;  %v802_v51 = vsel %vm792_vm14, %v788_v8, 1326507024 }
  0xc0   :  { %v800_v47 = vsel %vm790_vm4, %v797_v46, %v799_v45  ;;  %v643_v43 = vand.u32 3, %v642_v40  ;;  %v803_v55 = vsel %vm791_vm3, %v785_v42, %v802_v51  ;;  %v796_v57 = vsel %vm790_vm4, %v793_v20, %v795_v5 }
  0xc1   :  { %v721_v53 = vclz %v909_v2  ;;  %v1628_v56 = vmul.u32.u64.low %v805_v4, %v800_v47  ;;  %v1629_v35 = vmul.u32.u64.high %v805_v4, %v800_v47, %v1628_v56  ;;  %v804_v12 = vsel %vm790_vm4, %v801_v50, %v803_v55 }
  0xc2   :  { %v1633_v52 = vmul.u32.u64.low %v805_v4, %v804_v12  ;;  %v1634_v58 = vmul.u32.u64.high %v805_v4, %v804_v12, %v1633_v52  ;;  %vm645_vm5 = vcmp.eq.s32.totalorder %v643_v43, 0  ;;  %v709_v63 = vadd.s32 %v1558_v15, %v1567_v26 }
  0xc3   :  { %v910_v41 = vadd.s32 4294967294, %v721_v53  ;;  %vm648_vm7 = vcmp.eq.s32.totalorder %v643_v43, 2  ;;  %v812_v7 = vmul.u32 %v805_v4, %v796_v57  ;;  %v815_v9 = vadd.s32 1, %v1629_v35 }
  0xc4   :  { %vm641_vm8 = vweird.f32 %v1349_v49  ;;  %vm644_vm10 = vcmp.lt.s32.totalorder %v643_v43, 2  ;;  %vm814_vm9 = vc.u32 %v1634_v58, %v1628_v56  ;;  %v739_v23 = vsub.s32 4, %v1602_v62 }
  0xc5   :  { %vm911_vm6 = vcmp.lt.s32.totalorder %v910_v41, 0  ;;  %v816_v30 = vsel %vm814_vm9, %v815_v9, %v1629_v35  ;;  %vm655_vm11 = vcmp.lt.s32.totalorder %v1471_v33, 0  ;;  %vm654_vm12 = vcmp.le.f32.partialorder %v653_v54, 0.7853982 }
  0xc6   :  { %v977_v61 = vpop.eup %976  ;;  %v724_v6 = vsel %vm911_vm6, 0, %v910_v41  ;;  %v817_v18 = vadd.s32 %v816_v30, %v812_v7  ;;  %v740_v36 = vsel %vm655_vm11, %v739_v23, %v1602_v62  ;;  %v813_v48 = vadd.s32 %v1628_v56, %v1634_v58 }
  0xc7   :  { %v979_v13 = vpop.eup %978  ;;  %v649_v11 = vxor.u32 2147483648, %v977_v61  ;;  %v725_v22 = vsub.s32 32, %v724_v6  ;;  %v726_v60 = vshll.u32 %v717_v28, %v724_v6  ;;  %v729_v10 = vsub.s32 4294967266, %v724_v6 }
  0xc8   :  { %v646_v14 = vxor.u32 2147483648, %v979_v13  ;;  %v818_v16 = vadd.s32 536870912, %v817_v18  ;;  %v742_v40 = vsel %vm654_vm12, 0, %v740_v36  ;;  %vm745_vm2 = vweird.f32 %v1471_v33 }
  0xc9   :  { %v650_v44 = vsel %vm648_vm7, %v649_v11, %v979_v13  ;;  %v727_v15 = vshrl.u32 %v709_v63, %v725_v22  ;;  %v730_v26 = vadd.s32 127, %v729_v10  ;;  %v746_v17 = vadd.s32 3, %v742_v40 }
  0xca   :  { %v647_v24 = vsel %vm645_vm5, %v977_v61, %v646_v14  ;;  %v819_v49 = vshrl.u32 %v818_v16, 30  ;;  %vm759_vm14 = vcmp.lt.s32.totalorder %v1511_v29, 0  ;;  %vm758_vm3 = vcmp.le.f32.partialorder %v757_v0, 0.7853982 }
  0xcb   :  { %v651_v59 = vsel %vm644_vm10, %v647_v24, %v650_v44  ;;  %v728_v25 = vor.u32 %v727_v15, %v726_v60  ;;  %v731_v19 = vshll.u32 %v730_v26, 23  ;;  %v747_v4 = vand.u32 3, %v746_v17 }
  0xcc   :  { %v652_v1 = vsel %vm641_vm8, nan, %v651_v59  ;;  %v820_v39 = vshll.u32 %v819_v49, 30  ;;  %v843_v58 = vsub.s32 4, %v819_v49  ;;  %vm849_vm7 = vweird.f32 %v1511_v29 }
  0xcd   :  { %v732_v21 = vor.u32 4788187, %v731_v19  ;;  %v735_v37 = vcvt.s32.f32 %v728_v25  ;;  %866 = vst [vmem:[#allocation5 + $0x28] sm:$0xff] %v652_v1  ;;  %vm752_vm15 = vcmp.eq.s32.totalorder %v747_v4, 2  ;;  %vm749_vm0 = vcmp.eq.s32.totalorder %v747_v4, 0 }
  0xce   :  { %v821_v3 = vsub.s32 %v817_v18, %v820_v39  ;;  %vm748_vm1 = vcmp.lt.s32.totalorder %v747_v4, 2  ;;  %v844_v7 = vsel %vm759_vm14, %v843_v58, %v819_v49 }
  0xcf   :  { %v733_v31 = vand.u32 2147483647, %v732_v21  ;;  %v846_v13 = vsel %vm758_vm3, 0, %v844_v7 }
  0xd0   :  { %v823_v38 = vsub.s32 0, %v821_v3  ;;  %v850_v11 = vadd.s32 3, %v846_v13 }
  0xd1   :  { %v736_v34 = vmul.f32 %v735_v37, %v733_v31 }
  0xd2   :  { %v913_v8 = vmin.u32 %v823_v38, %v821_v3  ;;  %v851_v22 = vand.u32 3, %v850_v11 }
  0xd3   :  { %v737_v42 = vxor.u32 2147483648, %v736_v34 }
  0xd4   :  { %v825_v32 = vclz %v913_v8  ;;  %vm856_vm4 = vcmp.eq.s32.totalorder %v851_v22, 2  ;;  %vm853_vm5 = vcmp.eq.s32.totalorder %v851_v22, 0  ;;  %vm852_vm6 = vcmp.lt.s32.totalorder %v851_v22, 2 }
  0xd5   :  { %v738_v28 = vsel %vm655_vm11, %v737_v42, %v736_v34 }
  0xd6   :  { %v741_v27 = vsel %vm654_vm12, %v1471_v33, %v738_v28  ;;  %v914_v46 = vadd.s32 4294967294, %v825_v32 }
  0xd7   :  { %980 = vcosq.f32 %v741_v27 }
  0xd8   :  { %982 = vsinq.f32 %v741_v27  ;;  %vm915_vm13 = vcmp.lt.s32.totalorder %v914_v46, 0 }
  0xd9   :  { %v828_v2 = vsel %vm915_vm13, 0, %v914_v46 }
  0xda   :  { %v829_v54 = vsub.s32 32, %v828_v2  ;;  %v830_v20 = vshll.u32 %v821_v3, %v828_v2  ;;  %v833_v45 = vsub.s32 4294967266, %v828_v2 }
  0xdc   :  { %v831_v62 = vshrl.u32 %v813_v48, %v829_v54  ;;  %v834_v5 = vadd.s32 127, %v833_v45 }
  0xde   :  { %v832_v43 = vor.u32 %v831_v62, %v830_v20  ;;  %v835_v53 = vshll.u32 %v834_v5, 23 }
  0xe0   :  { %v836_v35 = vor.u32 4788187, %v835_v53  ;;  %v839_v41 = vcvt.s32.f32 %v832_v43 }
  0xe1   :  { %v981_v47 = vpop.eup %980 }
  0xe2   :  { %v983_v50 = vpop.eup %982  ;;  %v753_v51 = vxor.u32 2147483648, %v981_v47  ;;  %v837_v52 = vand.u32 2147483647, %v836_v35 }
  0xe3   :  { %v750_v55 = vxor.u32 2147483648, %v983_v50 }
  0xe4   :  { %v754_v56 = vsel %vm752_vm15, %v753_v51, %v983_v50  ;;  %v840_v61 = vmul.f32 %v839_v41, %v837_v52 }
  0xe5   :  { %v751_v57 = vsel %vm749_vm0, %v981_v47, %v750_v55 }
  0xe6   :  { %v755_v12 = vsel %vm748_vm1, %v751_v57, %v754_v56  ;;  %v841_v6 = vxor.u32 2147483648, %v840_v61 }
  0xe7   :  { %v756_v63 = vsel %vm745_vm2, nan, %v755_v12 }
  0xe8   :  { %867 = vst [vmem:[#allocation5 + $0x30] sm:$0xff] %v756_v63  ;;  %v842_v9 = vsel %vm759_vm14, %v841_v6, %v840_v61 }
  0xe9   :  { %v845_v33 = vsel %vm758_vm3, %v1511_v29, %v842_v9 }
  0xea   :  { %984 = vcosq.f32 %v845_v33 }
  0xeb   :  { %986 = vsinq.f32 %v845_v33 }
  0xf4   :  { %v985_v60 = vpop.eup %984 }
  0xf5   :  { %v987_v10 = vpop.eup %986  ;;  %v857_v14 = vxor.u32 2147483648, %v985_v60 }
  0xf6   :  { %v854_v44 = vxor.u32 2147483648, %v987_v10 }
  0xf7   :  { %v858_v0 = vsel %vm856_vm4, %v857_v14, %v987_v10 }
  0xf8   :  { %v855_v15 = vsel %vm853_vm5, %v985_v60, %v854_v44 }
  0xf9   :  { %v859_v26 = vsel %vm852_vm6, %v855_v15, %v858_v0 }
  0xfa   :  { %v860_v30 = vsel %vm849_vm7, nan, %v859_v26 }
  0xfb   :  { %868 = vst [vmem:[#allocation5 + $0x38] sm:$0xff] %v860_v30 }
  0xfc   :  { %1021 = shalt.err (!%p1018_p12)
}
  0xfd   :  { %s1022_s22 = scalar_lea.hbm %s1669_s1, 1024 }
  0xfe   :  { %p1023_p13 = scmp.ne.s32.totalorder %s1669_s1, %s1022_s22  ;;  %p1026_p0 = scmp.lt.u32.totalorder %s1022_s22, %s1669_s1 }
 0x100   :  { %p1028_p1 = pnand %p1026_p0, %p1023_p13 }
 0x102   :  { %1031 = shalt.err (!%p1028_p1)
}
 0x103   :  { %878 = dma.vmem_to_hbm [thread:$0]  %s876_s18, 1024, %s1669_s1, [#allocation4]  }
 0x104   :  { %1034 = dma.done.wait [#allocation4], 1024  }
 0x105   :  { %1035 = vsyncadd [#allocation4], 4294966272 }
 0x106   :  { %882 = vsyncpa [#allocation3], 1 }
 0x107   :  { %883 = vsyncpa [#allocation4], 1 }

</bundles_post_ra>
